<compile_context>
chip_gen: v5e
topology: v5e:2x2
jax: 0.10.0
libtpu: 0.0.40
codegen_flags: <defaults>
</compile_context>

<pallas_src>
import math

import numpy as np
import jax
import jax.numpy as jnp
from jax.experimental import pallas as pl
from jax.experimental.pallas import tpu as pltpu


def unit_tcn_forward(x, weight, bias, gamma, beta, running_mean, running_var,
                     *, kernel_size=9, stride=1, eps=1e-5,
                     out_dtype=jnp.float32):
    """x: (N, C_in, T, V).  Returns (N, C_out, T_out, V) in `out_dtype`.

    Inference-mode BatchNorm2d(Conv2d(x)) with conv bias + BN folded into a
    per-channel scale (folded into the weights) and shift (added in epilogue).
    """
    N, C_in, T, V = x.shape
    C_out = weight.shape[0]
    K = kernel_size
    pad = (K - 1) // 2
    T_out = (T + 2 * pad - K) // stride + 1
    M = T_out * V                      # lane dimension of the output slab

    # --- fold conv bias + inference BatchNorm (wrapper side, tiny) ----------
    scale = gamma / jnp.sqrt(running_var + eps)                 # (C_out,)
    shift = ((bias - running_mean) * scale + beta)              # (C_out,)
    shift = shift.reshape(C_out, 1).astype(jnp.float32)
    # (C_out, C_in, K, 1) -> (C_out, K, C_in) -> (C_out, K*C_in), bf16,
    # BN scale folded in.  Column block k matches stack row block k.
    w_fold = (weight[:, :, :, 0] * scale[:, None, None])        # (C_out, C_in, K)
    w_fold = jnp.transpose(w_fold, (0, 2, 1)).reshape(C_out, K * C_in)
    w_fold = w_fold.astype(jnp.bfloat16)

    # --- C_out tiling (VMEM headroom on v7x; harmless elsewhere) ------------
    c_tile = 128 if (C_out % 128 == 0) else C_out
    nc = C_out // c_tile

    # --- input layout --------------------------------------------------------
    if stride == 1:
        # Free contiguous merge of (T, V); NO wrapper cast, NO wrapper pad —
        # both happen inside the kernel while building the stacked operand.
        x_in = x.reshape(N, C_in, T * V)
        x_spec = pl.BlockSpec((1, C_in, T * V), lambda n, c: (n, 0, 0))
    else:
        # Lane-dense phase split: phase p holds padded times p, p+s, ...
        # Tap k reads phase (k % s) at lane offset (k // s) * V, length M.
        T_pad = T + 2 * pad
        T_phase = (K - 1) // stride + T_out
        x_pad = jnp.pad(x.astype(jnp.bfloat16),
                        ((0, 0), (0, 0), (pad, pad), (0, 0)))
        phases = []
        for p in range(stride):
            ph = x_pad[:, :, p::stride, :]
            Lp = ph.shape[2]
            if Lp < T_phase:
                ph = jnp.pad(ph, ((0, 0), (0, 0), (0, T_phase - Lp), (0, 0)))
            else:
                ph = ph[:, :, :T_phase, :]
            phases.append(ph.reshape(N, C_in, T_phase * V))
        x_in = jnp.stack(phases, axis=1)        # (N, stride, C_in, T_phase*V)
        x_spec = pl.BlockSpec((1, stride, C_in, T_phase * V),
                              lambda n, c: (n, 0, 0, 0))

    def kernel(x_ref, w_ref, shift_ref, o_ref, stack_ref):
        # x_ref:     (1, C_in, T*V) [stride==1] or (1, s, C_in, T_phase*V)
        # w_ref:     (c_tile, K*C_in)   bf16, BN scale folded in
        # shift_ref: (c_tile, 1)        f32
        # o_ref:     (1, c_tile, M)
        # stack_ref: (K*C_in, M)        bf16 VMEM scratch (persists over c)
        c = pl.program_id(1)

        # Build the stacked operand once per sample; re-used for all C_out
        # tiles (c axis is "arbitrary" => sequential on one core).
        @pl.when(c == 0)
        def _build_stack():
            for k in range(K):                  # static, unrolled tap loop
                r0 = k * C_in
                if stride == 1:
                    off = (k - pad) * V         # tap shift in lanes
                    if off < 0:                 # leading zero pad
                        z = -off
                        stack_ref[r0:r0 + C_in, 0:z] = jnp.zeros(
                            (C_in, z), jnp.bfloat16)
                        stack_ref[r0:r0 + C_in, z:M] = (
                            x_ref[0, :, 0:M - z].astype(jnp.bfloat16))
                    elif off > 0:               # trailing zero pad
                        stack_ref[r0:r0 + C_in, 0:M - off] = (
                            x_ref[0, :, off:M].astype(jnp.bfloat16))
                        stack_ref[r0:r0 + C_in, M - off:M] = jnp.zeros(
                            (C_in, off), jnp.bfloat16)
                    else:
                        stack_ref[r0:r0 + C_in, :] = (
                            x_ref[0, :, :].astype(jnp.bfloat16))
                else:
                    p = k % stride
                    off = (k // stride) * V
                    stack_ref[r0:r0 + C_in, :] = (
                        x_ref[0, p, :, off:off + M].astype(jnp.bfloat16))

        # Single deep MXU contraction over K*C_in; f32 accumulation stays in
        # the MXU result buffer; only a per-channel shift add in the epilogue.
        acc = jnp.dot(w_ref[...], stack_ref[...],
                      preferred_element_type=jnp.float32)
        o_ref[0] = (acc + shift_ref[...]).astype(o_ref.dtype)

    flops = 2 * N * K * C_out * C_in * M
    bytes_accessed = int(x_in.size * x_in.dtype.itemsize
                         + w_fold.size * w_fold.dtype.itemsize
                         + shift.size * 4
                         + N * C_out * M * np.dtype(out_dtype).itemsize)

    out_flat = pl.pallas_call(
        kernel,
        out_shape=jax.ShapeDtypeStruct((N, C_out, M), out_dtype),
        grid=(N, nc),
        in_specs=[
            x_spec,
            pl.BlockSpec((c_tile, K * C_in), lambda n, c: (c, 0)),
            pl.BlockSpec((c_tile, 1), lambda n, c: (c, 0)),
        ],
        out_specs=pl.BlockSpec((1, c_tile, M), lambda n, c: (n, c, 0)),
        scratch_shapes=[pltpu.VMEM((K * C_in, M), jnp.bfloat16)],
        compiler_params=pltpu.CompilerParams(
            # N: parallel (megacore); C_out tiles: sequential (scratch reuse).
            dimension_semantics=("parallel", "arbitrary"),
            # >= v5e's 16 MiB default scoped limit; below v7x's 64 MiB VMEM.
            vmem_limit_bytes=48 * 1024 * 1024),
        cost_estimate=pl.CostEstimate(flops=flops, transcendentals=0,
                                      bytes_accessed=bytes_accessed),
    )(x_in, w_fold, shift)

    # (N, C_out, T_out*V) -> NCHW; contiguous split of the last dim is free.
    return out_flat.reshape(N, C_out, T_out, V)


def _reference(x, weight, bias, gamma, beta, mean, var, *, stride, pad, eps=1e-5):
    y = jax.lax.conv_general_dilated(
        x, weight, window_strides=(stride, 1),
        padding=((pad, pad), (0, 0)),
        dimension_numbers=("NCHW", "OIHW", "NCHW"))
    y = y + bias[None, :, None, None]
    y = (y - mean[None, :, None, None]) / jnp.sqrt(var[None, :, None, None] + eps)
    y = y * gamma[None, :, None, None] + beta[None, :, None, None]
    return y


if __name__ == "__main__":
    # small shapes: N=2, C_in=4, C_out=8, T=16, V=16, kernel_size=9
    N, C_in, C_out, T, V = 2, 4, 8, 16, 16
    K = 9
    pad = (K - 1) // 2

    key = jax.random.PRNGKey(0)
    kx, kw = jax.random.split(key)
    x = jax.random.normal(kx, (N, C_in, T, V), dtype=jnp.float32)

    # conv_init: kaiming_normal_(mode='fan_out') -> std = sqrt(2 / fan_out)
    fan_out = C_out * K * 1
    w_std = math.sqrt(2.0 / fan_out)
    weight = jax.random.normal(kw, (C_out, C_in, K, 1), dtype=jnp.float32) * w_std
    bias = jnp.zeros((C_out,), dtype=jnp.float32)         # conv bias init 0

    # bn_init(bn, 1): gamma=1, beta=0; fresh running stats: mean=0, var=1
    gamma = jnp.ones((C_out,), dtype=jnp.float32)
    beta = jnp.zeros((C_out,), dtype=jnp.float32)
    running_mean = jnp.zeros((C_out,), dtype=jnp.float32)
    running_var = jnp.ones((C_out,), dtype=jnp.float32)

    ok = True
    for stride in (1, 2):               # validate both layouts / code paths
        out = unit_tcn_forward(x, weight, bias, gamma, beta,
                               running_mean, running_var,
                               kernel_size=K, stride=stride)
        out = jax.block_until_ready(out)
        ref = _reference(x, weight, bias, gamma, beta, running_mean,
                         running_var, stride=stride, pad=pad)
        T_out = (T + 2 * pad - K) // stride + 1
        assert out.shape == ref.shape == (N, C_out, T_out, V)
        # bf16 MXU operands with f32 accumulation -> loosened tolerance
        err = float(jnp.max(jnp.abs(out - ref)))
        ok = ok and bool(jnp.allclose(out, ref, atol=5e-2, rtol=5e-2))
        assert ok, (stride, err)

    print("KERNEL_OK")
</pallas_src>

<mosaic_0001>
module attributes {stable_mosaic.version = 11 : i64} {
  func.func @kernel(%arg0: i32, %arg1: i32, %arg2: memref<1x4x256xf32, #tpu.memory_space<vmem>>, %arg3: memref<8x36xbf16, #tpu.memory_space<vmem>>, %arg4: memref<8x1xf32, #tpu.memory_space<vmem>>, %arg5: memref<1x8x256xf32, #tpu.memory_space<vmem>>, %arg6: memref<36x256xbf16, #tpu.memory_space<vmem>>) attributes {dimension_semantics = [#tpu.dimension_semantics<parallel>, #tpu.dimension_semantics<arbitrary>], iteration_bounds = array<i64: 2, 1>, scalar_prefetch = 0 : i64, scratch_operands = 1 : i64, tpu.core_type = #tpu.core_type<tc>, window_params = [{transform_indices = @transform_0, window_bounds = array<i64: 1, 4, 256>}, {transform_indices = @transform_1, window_bounds = array<i64: 8, 36>}, {transform_indices = @transform_2, window_bounds = array<i64: 8, 1>}, {transform_indices = @transform_3, window_bounds = array<i64: 1, 8, 256>}]} {
    %c0_i32 = arith.constant 0 : i32
    %0 = arith.cmpi eq, %arg1, %c0_i32 : i32
    %1 = arith.extui %0 : i1 to i32
    %c0_i32_0 = arith.constant 0 : i32
    %2 = arith.cmpi ne, %1, %c0_i32_0 : i32
    scf.if %2 {
      %cst_9 = arith.constant 0.000000e+00 : bf16
      %12 = vector.broadcast %cst_9 : bf16 to vector<4x64xbf16>
      %c0_10 = arith.constant 0 : index
      %c0_11 = arith.constant 0 : index
      %13 = vector.load %arg6[%c0_10, %c0_11] : memref<36x256xbf16, #tpu.memory_space<vmem>>, vector<4x64xbf16>
      tpu.vector_store %arg6[%c0_10, %c0_11], %12 {strides = array<i32>} : memref<36x256xbf16, #tpu.memory_space<vmem>>, vector<4x64xbf16>,
      %c0_12 = arith.constant 0 : index
      %c0_13 = arith.constant 0 : index
      %c0_14 = arith.constant 0 : index
      %14 = vector.load %arg2[%c0_12, %c0_13, %c0_14] : memref<1x4x256xf32, #tpu.memory_space<vmem>>, vector<1x4x192xf32>
      %15 = vector.shape_cast %14 : vector<1x4x192xf32> to vector<4x192xf32>
      %16 = arith.truncf %15 : vector<4x192xf32> to vector<4x192xbf16>
      %c0_15 = arith.constant 0 : index
      %c64 = arith.constant 64 : index
      %17 = vector.load %arg6[%c0_15, %c64] : memref<36x256xbf16, #tpu.memory_space<vmem>>, vector<4x192xbf16>
      tpu.vector_store %arg6[%c0_15, %c64], %16 {strides = array<i32>} : memref<36x256xbf16, #tpu.memory_space<vmem>>, vector<4x192xbf16>,
      %cst_16 = arith.constant 0.000000e+00 : bf16
      %18 = vector.broadcast %cst_16 : bf16 to vector<4x48xbf16>
      %c4 = arith.constant 4 : index
      %c0_17 = arith.constant 0 : index
      %19 = vector.load %arg6[%c4, %c0_17] : memref<36x256xbf16, #tpu.memory_space<vmem>>, vector<4x48xbf16>
      tpu.vector_store %arg6[%c4, %c0_17], %18 {strides = array<i32>} : memref<36x256xbf16, #tpu.memory_space<vmem>>, vector<4x48xbf16>,
      %c0_18 = arith.constant 0 : index
      %c0_19 = arith.constant 0 : index
      %c0_20 = arith.constant 0 : index
      %20 = vector.load %arg2[%c0_18, %c0_19, %c0_20] : memref<1x4x256xf32, #tpu.memory_space<vmem>>, vector<1x4x208xf32>
      %21 = vector.shape_cast %20 : vector<1x4x208xf32> to vector<4x208xf32>
      %22 = arith.truncf %21 : vector<4x208xf32> to vector<4x208xbf16>
      %c4_21 = arith.constant 4 : index
      %c48 = arith.constant 48 : index
      %23 = vector.load %arg6[%c4_21, %c48] : memref<36x256xbf16, #tpu.memory_space<vmem>>, vector<4x208xbf16>
      tpu.vector_store %arg6[%c4_21, %c48], %22 {strides = array<i32>} : memref<36x256xbf16, #tpu.memory_space<vmem>>, vector<4x208xbf16>,
      %cst_22 = arith.constant 0.000000e+00 : bf16
      %24 = vector.broadcast %cst_22 : bf16 to vector<4x32xbf16>
      %c8 = arith.constant 8 : index
      %c0_23 = arith.constant 0 : index
      %25 = vector.load %arg6[%c8, %c0_23] : memref<36x256xbf16, #tpu.memory_space<vmem>>, vector<4x32xbf16>
      tpu.vector_store %arg6[%c8, %c0_23], %24 {strides = array<i32>} : memref<36x256xbf16, #tpu.memory_space<vmem>>, vector<4x32xbf16>,
      %c0_24 = arith.constant 0 : index
      %c0_25 = arith.constant 0 : index
      %c0_26 = arith.constant 0 : index
      %26 = vector.load %arg2[%c0_24, %c0_25, %c0_26] : memref<1x4x256xf32, #tpu.memory_space<vmem>>, vector<1x4x224xf32>
      %27 = vector.shape_cast %26 : vector<1x4x224xf32> to vector<4x224xf32>
      %28 = arith.truncf %27 : vector<4x224xf32> to vector<4x224xbf16>
      %c8_27 = arith.constant 8 : index
      %c32 = arith.constant 32 : index
      %29 = vector.load %arg6[%c8_27, %c32] : memref<36x256xbf16, #tpu.memory_space<vmem>>, vector<4x224xbf16>
      tpu.vector_store %arg6[%c8_27, %c32], %28 {strides = array<i32>} : memref<36x256xbf16, #tpu.memory_space<vmem>>, vector<4x224xbf16>,
      %cst_28 = arith.constant 0.000000e+00 : bf16
      %30 = vector.broadcast %cst_28 : bf16 to vector<4x16xbf16>
      %c12 = arith.constant 12 : index
      %c0_29 = arith.constant 0 : index
      %31 = vector.load %arg6[%c12, %c0_29] : memref<36x256xbf16, #tpu.memory_space<vmem>>, vector<4x16xbf16>
      tpu.vector_store %arg6[%c12, %c0_29], %30 {strides = array<i32>} : memref<36x256xbf16, #tpu.memory_space<vmem>>, vector<4x16xbf16>,
      %c0_30 = arith.constant 0 : index
      %c0_31 = arith.constant 0 : index
      %c0_32 = arith.constant 0 : index
      %32 = vector.load %arg2[%c0_30, %c0_31, %c0_32] : memref<1x4x256xf32, #tpu.memory_space<vmem>>, vector<1x4x240xf32>
      %33 = vector.shape_cast %32 : vector<1x4x240xf32> to vector<4x240xf32>
      %34 = arith.truncf %33 : vector<4x240xf32> to vector<4x240xbf16>
      %c12_33 = arith.constant 12 : index
      %c16 = arith.constant 16 : index
      %35 = vector.load %arg6[%c12_33, %c16] : memref<36x256xbf16, #tpu.memory_space<vmem>>, vector<4x240xbf16>
      tpu.vector_store %arg6[%c12_33, %c16], %34 {strides = array<i32>} : memref<36x256xbf16, #tpu.memory_space<vmem>>, vector<4x240xbf16>,
      %c0_34 = arith.constant 0 : index
      %c0_35 = arith.constant 0 : index
      %c0_36 = arith.constant 0 : index
      %36 = vector.load %arg2[%c0_34, %c0_35, %c0_36] : memref<1x4x256xf32, #tpu.memory_space<vmem>>, vector<1x4x256xf32>
      %37 = vector.shape_cast %36 : vector<1x4x256xf32> to vector<4x256xf32>
      %38 = arith.truncf %37 : vector<4x256xf32> to vector<4x256xbf16>
      %c16_37 = arith.constant 16 : index
      %c0_38 = arith.constant 0 : index
      %39 = vector.load %arg6[%c16_37, %c0_38] : memref<36x256xbf16, #tpu.memory_space<vmem>>, vector<4x256xbf16>
      tpu.vector_store %arg6[%c16_37, %c0_38], %38 {strides = array<i32>} : memref<36x256xbf16, #tpu.memory_space<vmem>>, vector<4x256xbf16>,
      %c0_39 = arith.constant 0 : index
      %c0_40 = arith.constant 0 : index
      %c16_41 = arith.constant 16 : index
      %40 = vector.load %arg2[%c0_39, %c0_40, %c16_41] : memref<1x4x256xf32, #tpu.memory_space<vmem>>, vector<1x4x240xf32>
      %41 = vector.shape_cast %40 : vector<1x4x240xf32> to vector<4x240xf32>
      %42 = arith.truncf %41 : vector<4x240xf32> to vector<4x240xbf16>
      %c20 = arith.constant 20 : index
      %c0_42 = arith.constant 0 : index
      %43 = vector.load %arg6[%c20, %c0_42] : memref<36x256xbf16, #tpu.memory_space<vmem>>, vector<4x240xbf16>
      tpu.vector_store %arg6[%c20, %c0_42], %42 {strides = array<i32>} : memref<36x256xbf16, #tpu.memory_space<vmem>>, vector<4x240xbf16>,
      %cst_43 = arith.constant 0.000000e+00 : bf16
      %44 = vector.broadcast %cst_43 : bf16 to vector<4x16xbf16>
      %c20_44 = arith.constant 20 : index
      %c240 = arith.constant 240 : index
      %45 = vector.load %arg6[%c20_44, %c240] : memref<36x256xbf16, #tpu.memory_space<vmem>>, vector<4x16xbf16>
      tpu.vector_store %arg6[%c20_44, %c240], %44 {strides = array<i32>} : memref<36x256xbf16, #tpu.memory_space<vmem>>, vector<4x16xbf16>,
      %c0_45 = arith.constant 0 : index
      %c0_46 = arith.constant 0 : index
      %c32_47 = arith.constant 32 : index
      %46 = vector.load %arg2[%c0_45, %c0_46, %c32_47] : memref<1x4x256xf32, #tpu.memory_space<vmem>>, vector<1x4x224xf32>
      %47 = vector.shape_cast %46 : vector<1x4x224xf32> to vector<4x224xf32>
      %48 = arith.truncf %47 : vector<4x224xf32> to vector<4x224xbf16>
      %c24 = arith.constant 24 : index
      %c0_48 = arith.constant 0 : index
      %49 = vector.load %arg6[%c24, %c0_48] : memref<36x256xbf16, #tpu.memory_space<vmem>>, vector<4x224xbf16>
      tpu.vector_store %arg6[%c24, %c0_48], %48 {strides = array<i32>} : memref<36x256xbf16, #tpu.memory_space<vmem>>, vector<4x224xbf16>,
      %cst_49 = arith.constant 0.000000e+00 : bf16
      %50 = vector.broadcast %cst_49 : bf16 to vector<4x32xbf16>
      %c24_50 = arith.constant 24 : index
      %c224 = arith.constant 224 : index
      %51 = vector.load %arg6[%c24_50, %c224] : memref<36x256xbf16, #tpu.memory_space<vmem>>, vector<4x32xbf16>
      tpu.vector_store %arg6[%c24_50, %c224], %50 {strides = array<i32>} : memref<36x256xbf16, #tpu.memory_space<vmem>>, vector<4x32xbf16>,
      %c0_51 = arith.constant 0 : index
      %c0_52 = arith.constant 0 : index
      %c48_53 = arith.constant 48 : index
      %52 = vector.load %arg2[%c0_51, %c0_52, %c48_53] : memref<1x4x256xf32, #tpu.memory_space<vmem>>, vector<1x4x208xf32>
      %53 = vector.shape_cast %52 : vector<1x4x208xf32> to vector<4x208xf32>
      %54 = arith.truncf %53 : vector<4x208xf32> to vector<4x208xbf16>
      %c28 = arith.constant 28 : index
      %c0_54 = arith.constant 0 : index
      %55 = vector.load %arg6[%c28, %c0_54] : memref<36x256xbf16, #tpu.memory_space<vmem>>, vector<4x208xbf16>
      tpu.vector_store %arg6[%c28, %c0_54], %54 {strides = array<i32>} : memref<36x256xbf16, #tpu.memory_space<vmem>>, vector<4x208xbf16>,
      %cst_55 = arith.constant 0.000000e+00 : bf16
      %56 = vector.broadcast %cst_55 : bf16 to vector<4x48xbf16>
      %c28_56 = arith.constant 28 : index
      %c208 = arith.constant 208 : index
      %57 = vector.load %arg6[%c28_56, %c208] : memref<36x256xbf16, #tpu.memory_space<vmem>>, vector<4x48xbf16>
      tpu.vector_store %arg6[%c28_56, %c208], %56 {strides = array<i32>} : memref<36x256xbf16, #tpu.memory_space<vmem>>, vector<4x48xbf16>,
      %c0_57 = arith.constant 0 : index
      %c0_58 = arith.constant 0 : index
      %c64_59 = arith.constant 64 : index
      %58 = vector.load %arg2[%c0_57, %c0_58, %c64_59] : memref<1x4x256xf32, #tpu.memory_space<vmem>>, vector<1x4x192xf32>
      %59 = vector.shape_cast %58 : vector<1x4x192xf32> to vector<4x192xf32>
      %60 = arith.truncf %59 : vector<4x192xf32> to vector<4x192xbf16>
      %c32_60 = arith.constant 32 : index
      %c0_61 = arith.constant 0 : index
      %61 = vector.load %arg6[%c32_60, %c0_61] : memref<36x256xbf16, #tpu.memory_space<vmem>>, vector<4x192xbf16>
      tpu.vector_store %arg6[%c32_60, %c0_61], %60 {strides = array<i32>} : memref<36x256xbf16, #tpu.memory_space<vmem>>, vector<4x192xbf16>,
      %cst_62 = arith.constant 0.000000e+00 : bf16
      %62 = vector.broadcast %cst_62 : bf16 to vector<4x64xbf16>
      %c32_63 = arith.constant 32 : index
      %c192 = arith.constant 192 : index
      %63 = vector.load %arg6[%c32_63, %c192] : memref<36x256xbf16, #tpu.memory_space<vmem>>, vector<4x64xbf16>
      tpu.vector_store %arg6[%c32_63, %c192], %62 {strides = array<i32>} : memref<36x256xbf16, #tpu.memory_space<vmem>>, vector<4x64xbf16>,
    } else {
    }
    %c0 = arith.constant 0 : index
    %c0_1 = arith.constant 0 : index
    %3 = vector.load %arg3[%c0, %c0_1] : memref<8x36xbf16, #tpu.memory_space<vmem>>, vector<8x36xbf16>
    %c0_2 = arith.constant 0 : index
    %c0_3 = arith.constant 0 : index
    %4 = vector.load %arg6[%c0_2, %c0_3] : memref<36x256xbf16, #tpu.memory_space<vmem>>, vector<36x256xbf16>
    %cst = arith.constant dense<0.000000e+00> : vector<8x256xf32>
    %5 = tpu.matmul %3, %4, %cst {dimension_numbers = #tpu.dot_dimension_numbers<[1], [0], [0], [1], [0, 0, 1, 1], [], []>} : vector<8x36xbf16>, vector<36x256xbf16>, vector<8x256xf32> -> vector<8x256xf32>
    %c0_4 = arith.constant 0 : index
    %c0_5 = arith.constant 0 : index
    %6 = vector.load %arg4[%c0_4, %c0_5] : memref<8x1xf32, #tpu.memory_space<vmem>>, vector<8x1xf32>
    %7 = vector.broadcast %6 : vector<8x1xf32> to vector<8x256xf32>
    %8 = arith.addf %5, %7 : vector<8x256xf32>
    %c0_6 = arith.constant 0 : index
    %c0_7 = arith.constant 0 : index
    %c0_8 = arith.constant 0 : index
    %9 = vector.load %arg5[%c0_6, %c0_7, %c0_8] : memref<1x8x256xf32, #tpu.memory_space<vmem>>, vector<1x8x256xf32>
    %10 = vector.shape_cast %9 : vector<1x8x256xf32> to vector<8x256xf32>
    %11 = vector.shape_cast %8 : vector<8x256xf32> to vector<1x8x256xf32>
    tpu.vector_store %arg5[%c0_6, %c0_7, %c0_8], %11 {strides = array<i32>} : memref<1x8x256xf32, #tpu.memory_space<vmem>>, vector<1x8x256xf32>,
    return
  }
  func.func @transform_0(%arg0: i32, %arg1: i32) -> (i32, i32, i32) {
    %c0_i32 = arith.constant 0 : i32
    %c0_i32_0 = arith.constant 0 : i32
    %c0_i32_1 = arith.constant 0 : i32
    return %arg0, %c0_i32, %c0_i32_0 : i32, i32, i32
  }
  func.func @transform_1(%arg0: i32, %arg1: i32) -> (i32, i32) {
    %c0_i32 = arith.constant 0 : i32
    %c0_i32_0 = arith.constant 0 : i32
    return %arg1, %c0_i32 : i32, i32
  }
  func.func @transform_2(%arg0: i32, %arg1: i32) -> (i32, i32) {
    %c0_i32 = arith.constant 0 : i32
    %c0_i32_0 = arith.constant 0 : i32
    return %arg1, %c0_i32 : i32, i32
  }
  func.func @transform_3(%arg0: i32, %arg1: i32) -> (i32, i32, i32) {
    %c0_i32 = arith.constant 0 : i32
    %c0_i32_0 = arith.constant 0 : i32
    return %arg0, %arg1, %c0_i32 : i32, i32, i32
  }
}

</mosaic_0001>

<bundles_post_ra>
// kernel: tpu_custom_call.1
= control target key start
LH: loop header
LB: loop body
LE: loop exit
PB: predicated region body
PF: predicated region fallthrough
CT: control target
= control target key end

     0   :  { %8 = vsyncpa [#allocation4], 0  ;;  %s1035_s0 = inlined_call_operand.hbm [shape: f32[2,4,256], index: 0, kind: input, shape index: {}]   ;;  %s1036_s1 = inlined_call_operand.vmem [shape: bf16[8,36], index: 1, kind: input, shape index: {}]   ;;  %s1037_s2 = inlined_call_operand.vmem [shape: f32[8,1], index: 2, kind: input, shape index: {}]   ;;  %s1038_s3 = inlined_call_operand.hbm [shape: f32[2,8,256], index: 3, kind: output, shape index: {}]  }
   0x1   :  { %10 = vsyncpa [#allocation4 + $0x1], 0 }
   0x2   :  { %11 = vsyncpa [#allocation5], 0 }
   0x3   :  { %13 = vsyncpa [#allocation5 + $0x1], 0  ;;  %s878_s12 = smov 0   ;;  %s880_s13 = smov 0  }
   0x4   :  { %s882_s14 = smov 0   ;;  %s884_s15 = smov 0  }
   0x5   :  { %s886_s16 = smov 0   ;;  %s888_s17 = smov 0  }
   0x6 LB: > { %s623_s18 = sadd.s32 4294967295, %s848_s17   ;;  %s624_s19 = sadd.s32 4294967294, %s848_s17   ;;  %s848_s17 = sphi %s888_s17, %s19_s17   ;;  %s844_s16 = sphi %s886_s16, %s1047_s16   ;;  %s840_s15 = sphi %s884_s15, %s1046_s15   ;;  %s836_s14 = sphi %s882_s14, %s1045_s14   ;;  %s832_s13 = sphi %s880_s13, %s1044_s13   ;;  %s828_s12 = sphi %s878_s12, %s1043_s12  }
   0x7   : > { %s31_s20 = sadd.s32 1, %s844_s16  ;;  %s38_s21 = sadd.s32 1, %s836_s14 }
   0x8   : > { %p33_p0 = scmp.ge.s32.totalorder %s31_s20, 2  ;;  %p45_p1 = scmp.ne.s32.totalorder %s836_s14, %s832_s13 }
   0x9   : > { %p46_p2 = scmp.eq.s32.totalorder %s848_s17, 0  ;;  %p51_p3 = scmp.ne.s32.totalorder %s832_s13, %s828_s12 }
   0xa   : > { %s1049_s20 = smov (%p33_p0, %s31_s20), 0  ;;  %p52_p5 = scmp.eq.s32.totalorder %s623_s18, 0 }
   0xb   : > { %p919_p4 = por %p46_p2, %p45_p1  ;;  %s35_s23 = ssub.s32 %s844_s16, %s1049_s20 }
   0xc   : > { %p129_p6 = scmp.eq.s32.totalorder %s623_s18, 1  ;;  %p36_p7 = scmp.eq.s32.totalorder %s35_s23, 0 }
   0xd   : > { %p925_p8 = por %p52_p5, %p51_p3  ;;  %p135_p10 = scmp.eq.s32.totalorder %s624_s19, 1 }
   0xe   : > { %p929_p9 = por %p129_p6, %p45_p1  ;;  %p628_p12 = scmp.ge.s32.totalorder %s848_s17, 2 }
   0xf   : > { %s934_s26 = scalar_select %p36_p7, %s836_s14, %s38_s21  }
  0x10   : > { %p936_p11 = por %p135_p10, %p51_p3  ;;  %p676_p13 = scmp.lt.s32.totalorder %s848_s17, 2 }
  0x11   : > { %s169_s28 = sand.u32 1, %s836_s14   ;;  %s658_s30 = sshll.u32 %s844_s16, 3 }
  0x12   : > { %s629_s29 = sshll.u32 %s169_s28, 3  ;;  %s178_s6 = scalar_lea.hbm %s1035_s0, %s658_s30 }
  0x13   : > { %s173_s7 = scalar_lea.vmem [#allocation3], %s629_s29  ;;  %s180_s9 = sshll.u32 %s178_s6, 4  ;;  %s181_s9 = int_to_ptr.hbm [resolvable:$true] %s180_s9 }
  0x14   : > { %s182_s8 = sshll.u32 %s173_s7, 4  ;;  %p669_p0 = pnand %p676_p13, %p919_p4  ;;  %s183_s8 = int_to_ptr.vmem [resolvable:$true] %s182_s8 }
  0x15   : > { %p632_p1 = scmp.ge.s32.totalorder %s848_s17, 1  ;;  %p187_p2 = scmp.lt.s32.totalorder %s848_s17, 3 }
  0x16   : > { %s170_s10 = scalar_lea.sflag [#allocation4], %s169_s28 }
  0x17   : > { %671 = dma.hbm_to_vmem [thread:$0]  (!%p669_p0), %s181_s9, 128, %s183_s8, %s170_s10  }
  0x18   : > { %p188_p3 = pnand %p632_p1, %p187_p2 }
  0x19   : > { %s952_s11 = sand.u32 (!%p188_p3), 1, %s832_s13  }
  0x1a   : > { %191 = sbr.rel (%p188_p3) target bundleno = 388 (0x184), region = 32  ;;  %s633_s18 = sshll.u32 (!%p188_p3), %s952_s11, 3 }
  0x1b   : > { %s194_s19 = scalar_lea.sflag (!%p188_p3), [#allocation4], %s952_s11  ;;  %s197_s21 = scalar_lea.vmem (!%p188_p3), [#allocation3], %s633_s18 }
  0x1f   : > { %819 = dma.done.wait (%p925_p8), %s194_s19, 128  }
  0x20   : > { %821 = vsyncadd (%p925_p8), %s194_s19, 4294967168  ;;  %v244_v0 = vld [vmem:[%s197_s21] sm:$0xff]  ;;  %s850_s22 = smov 96   ;;  %s851_s23 = smov 64   ;;  %v857_v31 = vmov 0   ;;  %vm242_vm0 = vcmask 517120  }
  0x21   : > { %246 = vst [vmem:[#allocation1] ss:$2 sm:$0xff] %v244_v0  ;;  %s852_s24 = smov 80   ;;  %s853_s28 = smov 48   ;;  %734 = vset.pattern.permute.xlu2 %v857_v31  ;;  %735 = vset.pattern.permute.xlu0 %v857_v31  ;;  %vm259_vm1 = vcmask 1041920   ;;  %vm260_vm2 = vcmask 1045508  }
  0x22   : > { %s854_s29 = smov 16   ;;  %s855_s30 = smov 112   ;;  %vm261_vm3 = vmor %vm260_vm2, %vm259_vm1  ;;  %243 = vst.msk [vmem:[#allocation2] sm:$0x3] %vm242_vm0, %v857_v31  ;;  %vm256_vm4 = vcmask 523264   ;;  %vm263_vm5 = vcmask 388098  }
  0x23   : > { %s856_s4 = smov 32   ;;  %264 = vst.msk [vmem:[#allocation2] sm:$0xc] %vm263_vm5, %v857_v31  ;;  %vm281_vm6 = vcmask 1043842   ;;  %vm282_vm7 = vcmask 1047558   ;;  %vm278_vm8 = vcmask 392192  }
  0x24   : > { %vm283_vm9 = vmor %vm282_vm7, %vm281_vm6  ;;  %vm305_vm10 = vcmask 125954   ;;  %vm285_vm11 = vcmask 254976   ;;  %vm372_vm12 = vcmask 1041408   ;;  %vm373_vm13 = vcmask 783364   ;;  %v423_v47 = vld [vmem:[%s1037_s2] sm:$0xff]  ;;  %s663_s9 = sshll.u32 %s840_s15, 4 }
  0x25   : > { %306 = vst.msk [vmem:[#allocation2 + $0x8] sm:$0xc] %vm305_vm10, %v857_v31  ;;  %vm369_vm14 = vcmask 785408   ;;  %vm374_vm15 = vmor %vm373_vm13, %vm372_vm12  ;;  %vm376_vm0 = vcmask 1042176   ;;  %vm394_vm5 = vcmask 654342   ;;  %vm391_vm6 = vcmask 654336   ;;  %s507_s21 = scalar_lea.hbm %s1038_s3, %s663_s9 }
  0x26   : > { %286 = vst.msk [vmem:[#allocation2 + $0x8] sm:$0x3] %vm285_vm11, %v857_v31  ;;  %vm413_vm10 = vcmask 521220   ;;  %vm323_vm11 = vcmask 1043586   ;;  %s634_s10 = sshll.u32 %s952_s11, 4  ;;  %s786_s5 = scalar_lea.hbm %s1038_s3, 32 }
  0x27   : > { %vm414_vm13 = vmor %vm413_vm10, %vm372_vm12 }
  0x28   : > { %v247_v1 = vld.sshfl [vmem:[#allocation1] sm:$0xff pattern:$0x75316420]  ;;  %v248_v2 = vld.sshfl [vmem:[#allocation1 + $0x8] sm:$0xff pattern:$0x75316420] }
  0x29   : > { %267 = vst [vmem:[#allocation1] ss:$2 sm:$0xff] %v244_v0  ;;  %v251_v17 = vpack.c.bf16 %v248_v2, %v247_v1 }
  0x2b   : > { %253 = vrot.lane.b32.xlu2 %v251_v17, %s851_s23 }
  0x30   : > { %v268_v3 = vld.sshfl [vmem:[#allocation1] sm:$0xff pattern:$0x75316420]  ;;  %v269_v4 = vld.sshfl [vmem:[#allocation1 + $0x8] sm:$0xff pattern:$0x75316420] }
  0x31   : > { %289 = vst [vmem:[#allocation1] ss:$2 sm:$0xff] %v244_v0  ;;  %v272_v18 = vpack.c.bf16 %v269_v4, %v268_v3 }
  0x33   : > { %v274_v22 = vrot.slane %v272_v18, 6 }
  0x35   : > { %275 = vrot.lane.b32.xlu2 %v274_v22, %s853_s28  ;;  %s494_s28 = scalar_lea.sflag [#allocation5], %s952_s11 }
  0x38   : > { %v290_v5 = vld.sshfl [vmem:[#allocation1] sm:$0xff pattern:$0x75316420]  ;;  %v291_v6 = vld.sshfl [vmem:[#allocation1 + $0x8] sm:$0xff pattern:$0x75316420] }
  0x39   : > { %309 = vst [vmem:[#allocation1] ss:$2 sm:$0xff] %v244_v0  ;;  %v294_v13 = vpack.c.bf16 %v291_v6, %v290_v5 }
  0x3d   : > { %426 = vperm.xlu2 %734, %v423_v47  }
  0x40   : > { %v310_v7 = vld.sshfl [vmem:[#allocation1] sm:$0xff pattern:$0x75316420]  ;;  %v311_v8 = vld.sshfl [vmem:[#allocation1 + $0x8] sm:$0xff pattern:$0x75316420] }
  0x41   : > { %328 = vst [vmem:[#allocation1] ss:$2 sm:$0xff] %v244_v0  ;;  %v314_v24 = vpack.c.bf16 %v311_v8, %v310_v7 }
  0x43   : > { %v316_v28 = vrot.slane %v314_v24, 6 }
  0x48   : > { %v960_v9 = vld.sshfl [vmem:[#allocation1] sm:$0xff pattern:$0x75316420]  ;;  %v962_v10 = vld.sshfl [vmem:[#allocation1 + $0x8] sm:$0xff pattern:$0x75316420] }
  0x49   : > { %337 = vst [vmem:[#allocation1] ss:$2 sm:$0xff] %v244_v0  ;;  %v333_v38 = vpack.c.bf16 %v962_v10, %v960_v9 }
  0x4b   : > { %334 = vst [vmem:[#allocation2 + $0x10] sm:$0x33] %v333_v38 }
  0x50   : > { %v338_v11 = vld.sshfl [vmem:[#allocation1] sm:$0xff pattern:$0x75316420]  ;;  %v339_v12 = vld.sshfl [vmem:[#allocation1 + $0x8] sm:$0xff pattern:$0x75316420] }
  0x51   : > { %359 = vst [vmem:[#allocation1] ss:$2 sm:$0xff] %v244_v0  ;;  %v342_v29 = vpack.c.bf16 %v339_v12, %v338_v11 }
  0x53   : > { %v344_v30 = vrot.slane %v342_v29, 6 }
  0x58   : > { %v360_v14 = vld.sshfl [vmem:[#allocation1] sm:$0xff pattern:$0x75316420]  ;;  %v361_v15 = vld.sshfl [vmem:[#allocation1 + $0x8] sm:$0xff pattern:$0x75316420] }
  0x59   : > { %v364_v16 = vpack.c.bf16 %v361_v15, %v360_v14  ;;  %380 = vst [vmem:[#allocation1] ss:$2 sm:$0xff] %v244_v0 }
  0x5b   : > { %366 = vrot.lane.b32.xlu1 %v364_v16, %s850_s22  ;;  %s228_s22 = scalar_lea.vmem [#allocation6], %s634_s10 }
  0x60   : > { %v381_v19 = vld.sshfl [vmem:[#allocation1] sm:$0xff pattern:$0x75316420]  ;;  %v382_v20 = vld.sshfl [vmem:[#allocation1 + $0x8] sm:$0xff pattern:$0x75316420] }
  0x61   : > { %v385_v21 = vpack.c.bf16 %v382_v20, %v381_v19  ;;  %401 = vst [vmem:[#allocation1] ss:$2 sm:$0xff] %v244_v0 }
  0x63   : > { %v387_v23 = vrot.slane %v385_v21, 6 }
  0x65   : > { %388 = vrot.lane.b32.xlu1 %v387_v23, %s852_s24  ;;  %s511_s24 = sshll.u32 %s507_s21, 4  ;;  %s512_s24 = int_to_ptr.hbm [resolvable:$true] %s511_s24 }
  0x66   : > { %s780_s15 = sshra.s32 %s512_s24, 4  ;;  %s781_s15 = int_to_ptr.hbm [resolvable:$true] %s780_s15 }
  0x67   : > { %p787_p7 = scmp.lt.s32.totalorder %s781_s15, %s1038_s3 }
  0x68   : > { %v402_v25 = vld.sshfl [vmem:[#allocation1] sm:$0xff pattern:$0x75316420]  ;;  %v403_v26 = vld.sshfl [vmem:[#allocation1 + $0x8] sm:$0xff pattern:$0x75316420] }
  0x69   : > { %v406_v27 = vpack.c.bf16 %v403_v26, %v402_v25 }
  0x6b   : > { %408 = vrot.lane.b32.xlu0 %v406_v27, %s851_s23  ;;  %s509_s23 = sshll.u32 %s228_s22, 4  ;;  %s510_s23 = int_to_ptr.vmem [resolvable:$true] %s509_s23 }
  0x6d   : > { %317 = vrot.lane.b32.xlu1 %v316_v28, %s854_s29  ;;  %s782_s29 = scalar_lea.hbm %s781_s15, 16 }
  0x6e   : > { %p783_p4 = scmp.ne.s32.totalorder %s781_s15, %s782_s29  ;;  %p788_p8 = scmp.lt.s32.totalorder %s786_s5, %s782_s29 }
  0x70   : > { %p784_p5 = pnand %p783_p4, %p929_p9  ;;  %p789_p10 = por %p788_p8, %p787_p7 }
  0x72   : > { %p785_p6 = pneg %p784_p5 }
  0x73   : > { %345 = vrot.lane.b32.xlu0 %v344_v30, %s855_s30 }
  0x74   : > { %p790_p13 = pnand %p789_p10, %p785_p6 }
  0x7b   : > { %296 = vrot.lane.b32.xlu0 %v294_v13, %s856_s4  ;;  %v417_v13 = vld [vmem:[%s1036_s1] sm:$0xf] }
  0x85   : > { %v254_v32 = vpop.permute.xlu2 %253 }
  0x86   : > { %v255_v33 = vrot.slane %v254_v32, 4 }
  0x88   : > { %v257_v34 = vsel %vm256_vm4, %v255_v33, %v254_v32 }
  0x89   : > { %262 = vst.msk [vmem:[#allocation2] sm:$0x33] %vm261_vm3, %v257_v34  ;;  %vm351_vm3 = vcmask 1043458  }
  0x8f   : > { %v276_v35 = vpop.permute.xlu2 %275 }
  0x90   : > { %v277_v36 = vrot.slane %v276_v35, 4 }
  0x92   : > { %v279_v37 = vsel %vm278_vm8, %v277_v36, %v276_v35  ;;  %vm395_vm8 = vmor %vm394_vm5, %vm351_vm3  ;;  %vm348_vm5 = vcmask 916480  }
  0x93   : > { %284 = vst.msk [vmem:[#allocation2] sm:$0xcc] %vm283_vm9, %v279_v37  ;;  %vm397_vm9 = vcmask 1044098  }
  0x97   : > { %v427_v14 = vpop.permute.xlu2 %426 }
  0x9a   : > { %v637_v7 = vld [vmem:[#allocation2] sm:$0xf]  ;;  %v659_v9 = vld [vmem:[#allocation2 + $0x4] sm:$0xf] }
  0xcd   : > { %v367_v39 = vpop.permute.xlu1 %366 }
  0xce   : > { %v368_v40 = vrot.slane %v367_v39, 4 }
  0xd0   : > { %v370_v41 = vsel %vm369_vm14, %v367_v39, %v368_v40  ;;  %vm320_vm14 = vcmask 130048  }
  0xd1   : > { %375 = vst.msk [vmem:[#allocation2 + $0x18] sm:$0x33] %vm374_vm15, %v370_v41  ;;  %vm324_vm15 = vmor %vm282_vm7, %vm323_vm11  ;;  %vm299_vm7 = vcmask 261120  }
  0xd2   : > { %377 = vst.msk [vmem:[#allocation2 + $0x1c] sm:$0x3] %vm376_vm0, %v857_v31  ;;  %vm352_vm0 = vcmask 916486  }
  0xd7   : > { %v389_v42 = vpop.permute.xlu1 %388 }
  0xd8   : > { %v390_v43 = vrot.slane %v389_v42, 4 }
  0xda   : > { %v392_v44 = vsel %vm391_vm6, %v389_v42, %v390_v43  ;;  %vm353_vm6 = vmor %vm352_vm0, %vm351_vm3 }
  0xdb   : > { %396 = vst.msk [vmem:[#allocation2 + $0x18] sm:$0xcc] %vm395_vm8, %v392_v44  ;;  %vm355_vm8 = vcmask 1044354  }
  0xdc   : > { %398 = vst.msk [vmem:[#allocation2 + $0x1c] sm:$0xc] %vm397_vm9, %v857_v31 }
  0xdd   : > { %v409_v45 = vpop.permute.xlu0 %408 }
  0xde   : > { %v410_v46 = vrot.slane %v409_v45, 4 }
  0xdf   : > { %v318_v48 = vpop.permute.xlu1 %317 }
  0xe0   : > { %v411_v49 = vsel %vm256_vm4, %v409_v45, %v410_v46  ;;  %v319_v50 = vrot.slane %v318_v48, 4  ;;  %vm302_vm4 = vcmask 1041664  }
  0xe1   : > { %415 = vst.msk [vmem:[#allocation2 + $0x20] sm:$0x33] %vm414_vm13, %v411_v49 }
  0xe2   : > { %v321_v51 = vsel %vm320_vm14, %v319_v50, %v318_v48  ;;  %416 = vst.msk [vmem:[#allocation2 + $0x24] sm:$0x3] %vm259_vm1, %v857_v31  ;;  %vm303_vm1 = vmor %vm260_vm2, %vm302_vm4  ;;  %v662_v3 = vld [vmem:[#allocation2 + $0x14] sm:$0xf0]  ;;  %vm454_vm2 = vcmask 293888  }
  0xe3   : > { %325 = vst.msk [vmem:[#allocation2 + $0x8] sm:$0xcc] %vm324_vm15, %v321_v51  ;;  %v647_v0 = vld [vmem:[#allocation2 + $0x18] sm:$0xf0] }
  0xe5   : > { %v346_v52 = vpop.permute.xlu0 %345 }
  0xe6   : > { %v347_v53 = vrot.slane %v346_v52, 4 }
  0xe8   : > { %v349_v54 = vsel %vm348_vm5, %v346_v52, %v347_v53 }
  0xe9   : > { %354 = vst.msk [vmem:[#allocation2 + $0x10] sm:$0xcc] %vm353_vm6, %v349_v54  ;;  %v422_v55 = vld [vmem:[#allocation2 + $0x20] sm:$0x33] }
  0xea   : > { %356 = vst.msk [vmem:[#allocation2 + $0x14] sm:$0xc] %vm355_vm8, %v857_v31  ;;  %v442_v56 = vunpack.c.l.b16 %v422_v55  ;;  %v443_v57 = vunpack.c.h.b16 %v422_v55 }
  0xec   : > { %v448_v58 = vpack.c.b16 %v442_v56, %v442_v56  ;;  %v449_v59 = vpack.c.b16 %v443_v57, %v443_v57 }
  0xed   : > { %v297_v60 = vpop.permute.xlu0 %296 }
  0xee   : > { %v298_v61 = vrot.slane %v297_v60, 4  ;;  %v460_v62 = vsel %vm372_vm12, %v448_v58, 0  ;;  %v463_v63 = vsel %vm372_vm12, %v449_v59, 0 }
  0xef   : > { %470 = vmatpush.bf16.msra.mxu0 %v460_v62  ;;  %483 = vmatpush.bf16.msra.mxu1 %v463_v63 }
  0xf0   : > { %v300_v1 = vsel %vm299_vm7, %v298_v61, %v297_v60  ;;  %v645_v2 = vld [vmem:[#allocation2 + $0x10] sm:$0xf] }
  0xf1   : > { %304 = vst.msk [vmem:[#allocation2 + $0x8] sm:$0x33] %vm303_vm1, %v300_v1  ;;  %v646_v4 = vor.u32 %v662_v3, %v645_v2  ;;  %v661_v5 = vld [vmem:[#allocation2 + $0x14] sm:$0xf] }
  0xf2   : > { %v650_v6 = vor.u32 %v661_v5, %v647_v0 }
  0xf3   : > { %471 = vmatpush.bf16.msra.mxu0 %v646_v4 }
  0xf4   : > { %484 = vmatpush.bf16.msra.mxu1 %v650_v6 }
  0xf8   : > { %v660_v8 = vld [vmem:[#allocation2 + $0x4] sm:$0xf0]  ;;  %v639_v10 = vld [vmem:[#allocation2 + $0x8] sm:$0xf0] }
  0xf9   : > { %v638_v11 = vor.u32 %v660_v8, %v637_v7  ;;  %v642_v12 = vor.u32 %v659_v9, %v639_v10 }
  0xfb   : > { %472 = vmatpush.bf16.msra.mxu0 %v638_v11  ;;  %485 = vmatpush.bf16.msra.mxu1 %v642_v12 }
  0xfe   : > { %651 = vmatmul.msk.bf16.vlgmr.msra.gmra.mxu0 %vm454_vm2, %v417_v13  ;;  %652 = vmatmul.msk.bf16.vlgmr.msra.gmra.mxu1 %vm454_vm2, %v417_v13 }
 0x17b   : > { %v474_v15 = vpop.f32.mrf.mxu0  ;;  %v487_v16 = vpop.f32.mrf.mxu1 }
 0x17c   : > { %v475_v17 = vadd.f32 %v474_v15, %v427_v14  ;;  %v488_v18 = vadd.f32 %v487_v16, %v427_v14 }
 0x17e   : > { %491 = vst [vmem:[%s228_s22] sm:$0xff] %v475_v17 }
 0x17f   : > { %492 = vst [vmem:[%s228_s22 + $0x8] sm:$0xff] %v488_v18 }
 0x180   : > { %793 = shalt.err (!%p790_p13)
}
 0x181   : > { %666 = dma.vmem_to_hbm [thread:$0]  (%p929_p9), %s510_s23, 256, %s512_s24, %s494_s28  }
 0x183   : > { %v476_v19 = vpop.f32.mrf.mxu0  ;;  %v489_v20 = vpop.f32.mrf.mxu1 }
 0x184 PF: > { %s523_s11 = sand.u32 1, %s828_s12   ;;  %p673_p0 = pnand %p628_p12, %p936_p11 }
 0x185   : > { %s524_s8 = scalar_lea.sflag [#allocation5], %s523_s11 }
 0x186   : > { %p674_p1 = pneg %p673_p0 }
 0x188   : > { %823 = dma.done.wait (%p674_p1), %s524_s8, 256  }
 0x189   : > { %825 = vsyncadd (%p674_p1), %s524_s8, 4294967040  ;;  %s19_s17 = sadd.s32 1, %s848_s17   ;;  %s1043_s12 = smov %s832_s13 }
 0x18a   : > { %p16_p2 = scmp.ge.s32.totalorder %s19_s17, 4   ;;  %s1044_s13 = smov %s836_s14 }
 0x18b   : > { %s1045_s14 = smov %s934_s26  ;;  %s1046_s15 = smov %s844_s16 }
 0x18c   : > { %s1047_s16 = smov %s1049_s20  ;;  %18 = sbr.rel (!%p16_p2) target bundleno = 6 (0x6), region = 87 }
 0x191   :  { %530 = vsyncpa [#allocation4], 1 }
 0x192   :  { %532 = vsyncpa [#allocation4 + $0x1], 1 }
 0x193   :  { %533 = vsyncpa [#allocation5], 1 }
 0x194   :  { %535 = vsyncpa [#allocation5 + $0x1], 1 }

</bundles_post_ra>
